<compile_context>
chip_gen: v6e
topology: v6e:2x2x1
jax: 0.10.0
libtpu: 0.0.40
codegen_flags: <defaults>
</compile_context>

<pallas_src>
import jax
import jax.numpy as jnp
from jax.experimental import pallas as pl
from jax.experimental.pallas import tpu as pltpu


def _drop_path_kernel(scale_ref, x_ref, o_ref):
    # scale_ref: (TB, 1) per-row scale (0 for dropped samples, 1/keep_prob
    #            for kept samples) -> broadcast across lanes.
    # x_ref / o_ref: (TB, TN) tile of the flattened input / output.
    o_ref[...] = (x_ref[...] * scale_ref[...]).astype(o_ref.dtype)


def _round_up(a, m):
    return ((a + m - 1) // m) * m


def _vmem_plan():
    """Return (vmem_limit_bytes, target_block_bytes) per TPU generation."""
    vmem_cap = None
    try:
        vmem_cap = int(pltpu.get_tpu_info().vmem_capacity_bytes)
    except Exception:
        vmem_cap = None
    kind = ""
    try:
        kind = jax.devices()[0].device_kind.lower()
    except Exception:
        pass
    if (vmem_cap is not None and vmem_cap <= (64 << 20)) or "v7" in kind:
        # v7x: 64 MiB physical VMEM per TC -> ~6 MiB blocks, 48 MiB scoped.
        return 48 << 20, 6 << 20
    if "v5" in kind:
        # v5e: stay inside the 16 MiB default scoped VMEM -> ~2 MiB blocks.
        return 16 << 20, 2 << 20
    # v6e / unknown 128 MiB-VMEM chip: ~4 MiB blocks, generous scoped limit.
    return 64 << 20, 4 << 20


def drop_path(x, drop_prob, training, key):
    """Per-sample stochastic depth. x: (B, ...) e.g. (B, C, H, W)."""
    if drop_prob is None or float(drop_prob) == 0.0 or not training:
        return x

    keep_prob = 1.0 - float(drop_prob)
    B = int(x.shape[0])
    N = int(x.size) // B

    # Per-sample binarized keep mask + rescale (floor(keep_prob + U[0,1))).
    rnd = jax.random.uniform(key, (B,), dtype=jnp.float32)
    mask = jnp.floor(keep_prob + rnd)                       # 0.0 or 1.0
    scale = (mask * (1.0 / keep_prob)).reshape(B, 1)        # (B, 1) f32
    # For bf16/f16 inputs keep the multiply in x.dtype (matches torch, halves
    # vreg/VALU width on chips with bf16 VPU).
    if jnp.issubdtype(x.dtype, jnp.floating) and jnp.dtype(x.dtype).itemsize < 4:
        scale = scale.astype(x.dtype)

    itemsize = jnp.dtype(x.dtype).itemsize
    sub = max(8, 32 // max(itemsize, 1))      # sublane pack: 8 f32, 16 bf16

    # Fill sublanes for tiny batches: fold each sample into r rows.
    r = 1
    while (B * r < sub) and (N % (2 * r) == 0) and ((N // (2 * r)) % 128 == 0):
        r *= 2
    rows, N2 = B * r, N // r
    x2 = x.reshape(rows, N2)
    scale2 = jnp.repeat(scale, r, axis=0) if r > 1 else scale

    vmem_limit, block_target = _vmem_plan()

    # Row tile: sublane-aligned; allow more rows when the VMEM budget is big.
    tb_cap = 16 * sub if block_target >= (4 << 20) else 8 * sub
    TB = min(_round_up(rows, sub), tb_cap)
    # Lane tile: always a multiple of 128, capped so 2 in + 2 out
    # double-buffered tiles stay well inside the scoped VMEM budget.
    tn_max = max(128, (block_target // (TB * itemsize)) // 128 * 128)
    TN = min(_round_up(N2, 128), tn_max)

    # Megacore: make sure there are >=2 blocks along a parallel axis.
    if pl.cdiv(rows, TB) == 1 and pl.cdiv(N2, TN) == 1 and TN >= 256:
        TN = max(128, (TN // 2) // 128 * 128)

    grid = (pl.cdiv(rows, TB), pl.cdiv(N2, TN))

    out2 = pl.pallas_call(
        _drop_path_kernel,
        out_shape=jax.ShapeDtypeStruct((rows, N2), x.dtype),
        grid_spec=pltpu.PrefetchScalarGridSpec(
            num_scalar_prefetch=0,
            grid=grid,
            in_specs=[
                # per-row scale, broadcast across lanes inside the kernel
                pl.BlockSpec((TB, 1), lambda i, j: (i, 0)),
                # lane-dense data tile
                pl.BlockSpec((TB, TN), lambda i, j: (i, j)),
            ],
            out_specs=pl.BlockSpec((TB, TN), lambda i, j: (i, j)),
        ),
        input_output_aliases={1: 0},
        compiler_params=pltpu.CompilerParams(
            dimension_semantics=("parallel", "parallel"),
            vmem_limit_bytes=vmem_limit,
        ),
    )(scale2, x2)

    return out2.reshape(x.shape)


class DropPath:
    """Drop paths (Stochastic Depth) per sample, Pallas-backed."""

    def __init__(self, drop_prob=None):
        self.drop_prob = drop_prob
        self.training = True  # TODO(synk): torch nn.Module train/eval flag modeled as plain attribute

    def __call__(self, x, key):
        return drop_path(x, self.drop_prob, self.training, key)


def _ref_drop_path(x, drop_prob, key):
    keep_prob = 1.0 - float(drop_prob)
    B = x.shape[0]
    rnd = jax.random.uniform(key, (B,), dtype=jnp.float32)
    mask = jnp.floor(keep_prob + rnd)
    scale = (mask * (1.0 / keep_prob)).reshape((B,) + (1,) * (x.ndim - 1))
    if jnp.issubdtype(x.dtype, jnp.floating) and jnp.dtype(x.dtype).itemsize < 4:
        scale = scale.astype(x.dtype)
    return (x * scale).astype(x.dtype)


if __name__ == "__main__":
    key = jax.random.PRNGKey(0)
    kx, kmask = jax.random.split(key)

    # Main case: NCHW, per-sample size 1024 (lane-aligned).
    B, C, H, W = 2, 4, 16, 16
    x = jax.random.normal(kx, (B, C, H, W), dtype=jnp.float32)

    module = DropPath(drop_prob=0.2)
    module.training = True

    out = jax.block_until_ready(module(x, kmask))
    ref = _ref_drop_path(x, 0.2, kmask)
    assert out.shape == x.shape and out.dtype == x.dtype
    assert jnp.allclose(out, ref, atol=1e-6, rtol=1e-6)

    # bf16 path (scale cast to x.dtype, same tiling machinery).
    x_bf = x.astype(jnp.bfloat16)
    out_bf = jax.block_until_ready(module(x_bf, kmask))
    ref_bf = _ref_drop_path(x_bf, 0.2, kmask)
    assert out_bf.shape == x_bf.shape and out_bf.dtype == jnp.bfloat16
    assert jnp.allclose(out_bf.astype(jnp.float32), ref_bf.astype(jnp.float32),
                        atol=1e-2, rtol=1e-2)

    # Unaligned per-sample size (N = 231, not a multiple of 128): exercises
    # the capped 128-multiple TN with masked partial blocks.
    x_odd = jax.random.normal(kx, (2, 3, 7, 11), dtype=jnp.float32)
    out_odd = jax.block_until_ready(module(x_odd, kmask))
    ref_odd = _ref_drop_path(x_odd, 0.2, kmask)
    assert out_odd.shape == x_odd.shape
    assert jnp.allclose(out_odd, ref_odd, atol=1e-6, rtol=1e-6)

    # Eval / drop_prob=0 path must be identity.
    module.training = False
    out_eval = jax.block_until_ready(module(x, kmask))
    assert jnp.array_equal(out_eval, x)

    print("KERNEL_OK")
</pallas_src>

<mosaic_0001>
module attributes {stable_mosaic.version = 11 : i64} {
  func.func @_drop_path_kernel(%arg0: i32, %arg1: i32, %arg2: memref<8x1xf32, #tpu.memory_space<vmem>>, %arg3: memref<8x128xf32, #tpu.memory_space<vmem>>, %arg4: memref<8x128xf32, #tpu.memory_space<vmem>>) attributes {dimension_semantics = [#tpu.dimension_semantics<parallel>, #tpu.dimension_semantics<parallel>], iteration_bounds = array<i64: 1, 2>, scalar_prefetch = 0 : i64, scratch_operands = 0 : i64, tpu.core_type = #tpu.core_type<tc>, window_params = [{transform_indices = @transform_0, window_bounds = array<i64: 8, 1>}, {transform_indices = @transform_1, window_bounds = array<i64: 8, 128>}, {transform_indices = @transform_2, window_bounds = array<i64: 8, 128>}]} {
    %c0 = arith.constant 0 : index
    %c0_0 = arith.constant 0 : index
    %0 = vector.load %arg3[%c0, %c0_0] : memref<8x128xf32, #tpu.memory_space<vmem>>, vector<8x128xf32>
    %c0_1 = arith.constant 0 : index
    %c0_2 = arith.constant 0 : index
    %1 = vector.load %arg2[%c0_1, %c0_2] : memref<8x1xf32, #tpu.memory_space<vmem>>, vector<8x1xf32>
    %2 = vector.broadcast %1 : vector<8x1xf32> to vector<8x128xf32>
    %3 = arith.mulf %0, %2 : vector<8x128xf32>
    %c0_3 = arith.constant 0 : index
    %c0_4 = arith.constant 0 : index
    %4 = vector.load %arg4[%c0_3, %c0_4] : memref<8x128xf32, #tpu.memory_space<vmem>>, vector<8x128xf32>
    tpu.vector_store %arg4[%c0_3, %c0_4], %3 {strides = array<i32>} : memref<8x128xf32, #tpu.memory_space<vmem>>, vector<8x128xf32>,
    return
  }
  func.func @transform_0(%arg0: i32, %arg1: i32) -> (i32, i32) {
    %c0_i32 = arith.constant 0 : i32
    %c0_i32_0 = arith.constant 0 : i32
    return %arg0, %c0_i32 : i32, i32
  }
  func.func @transform_1(%arg0: i32, %arg1: i32) -> (i32, i32) {
    %c0_i32 = arith.constant 0 : i32
    return %arg0, %arg1 : i32, i32
  }
  func.func @transform_2(%arg0: i32, %arg1: i32) -> (i32, i32) {
    %c0_i32 = arith.constant 0 : i32
    return %arg0, %arg1 : i32, i32
  }
}

</mosaic_0001>

<bundles_post_ra>
// kernel: tpu_custom_call.1
= control target key start
LH: loop header
LB: loop body
LE: loop exit
PB: predicated region body
PF: predicated region fallthrough
CT: control target
= control target key end

     0   :  { %7 = vsyncpa [#allocation3], 0  ;;  %s659_s0 = inlined_call_operand.vmem [shape: f32[8,1], index: 0, kind: input, shape index: {}]   ;;  %s660_s1 = inlined_call_operand.hbm [shape: f32[8,256], index: 1, kind: input, shape index: {}, may-alias: {1,2}]   ;;  %s661_s2 = inlined_call_operand.hbm [shape: f32[8,256], index: 2, kind: output, shape index: {}, may-alias: {1,2}]  }
   0x1   :  { %9 = vsyncpa [#allocation3 + $0x1], 0 }
   0x2   :  { %10 = vsyncpa [#allocation4], 0 }
   0x3   :  { %12 = vsyncpa [#allocation4 + $0x1], 0  ;;  %s522_s9 = smov 0   ;;  %s524_s10 = smov 0  }
   0x4   :  { %s526_s11 = smov 0   ;;  %s528_s12 = smov 0  }
   0x5   :  { %s530_s13 = smov 0   ;;  %s532_s14 = smov 0  }
   0x6 LB: > { %s316_s15 = sadd.s32 4294967295, %s502_s14   ;;  %s317_s16 = sadd.s32 4294967294, %s502_s14   ;;  %s502_s14 = sphi %s532_s14, %s18_s14   ;;  %s498_s13 = sphi %s530_s13, %s673_s13   ;;  %s494_s12 = sphi %s528_s12, %s672_s12   ;;  %s490_s11 = sphi %s526_s11, %s671_s11   ;;  %s486_s10 = sphi %s524_s10, %s670_s10   ;;  %s482_s9 = sphi %s522_s9, %s669_s9  }
   0x7   : > { %s27_s17 = sadd.s32 1, %s498_s13  ;;  %s65_s18 = sadd.s32 1, %s490_s11 }
   0x8   : > { %p28_p0 = scmp.ge.s32.totalorder %s27_s17, 2  ;;  %p72_p1 = scmp.ne.s32.totalorder %s490_s11, %s486_s10 }
   0x9   : > { %p73_p2 = scmp.eq.s32.totalorder %s502_s14, 0  ;;  %p78_p3 = scmp.ne.s32.totalorder %s486_s10, %s482_s9 }
   0xa   : > { %s675_s17 = smov (%p28_p0, %s27_s17), 0  ;;  %p79_p5 = scmp.eq.s32.totalorder %s316_s15, 0 }
   0xb   : > { %p563_p4 = por %p73_p2, %p72_p1  ;;  %s61_s20 = ssub.s32 %s498_s13, %s675_s17 }
   0xc   : > { %p104_p6 = scmp.eq.s32.totalorder %s316_s15, 1  ;;  %p63_p7 = scmp.eq.s32.totalorder %s61_s20, 0 }
   0xd   : > { %p569_p8 = por %p79_p5, %p78_p3  ;;  %p110_p10 = scmp.eq.s32.totalorder %s317_s16, 1 }
   0xe   : > { %p573_p9 = por %p104_p6, %p72_p1  ;;  %p342_p13 = scmp.lt.s32.totalorder %s502_s14, 2 }
   0xf   : > { %s578_s23 = scalar_select %p63_p7, %s490_s11, %s65_s18  }
  0x10   : > { %p580_p11 = por %p110_p10, %p78_p3  ;;  %s137_s25 = sand.u32 1, %s490_s11  }
  0x11   : > { %s321_s26 = sshll.u32 %s137_s25, 3  ;;  %s322_s27 = sshll.u32 %s498_s13, 7 }
  0x12   : > { %s665_s24 = scalar_select %p580_p11, 1, 0 }
  0x13   : > { %s148_s30 = scalar_lea.hbm %s660_s1, %s322_s27  ;;  %s141_s3 = scalar_lea.vmem [#allocation2], %s321_s26 }
  0x14   : > { %s150_s4 = sshll.u32 %s141_s3, 4  ;;  %p593_p0 = pnand %p342_p13, %p563_p4  ;;  %s151_s4 = int_to_ptr.vmem [resolvable:$true] %s150_s4 }
  0x15   : > { %p323_p1 = scmp.ge.s32.totalorder %s502_s14, 1  ;;  %p155_p2 = scmp.lt.s32.totalorder %s502_s14, 3 }
  0x16   : > { %s138_s6 = scalar_lea.sflag [#allocation3], %s137_s25  ;;  %p396_p3 = pneg %p593_p0 }
  0x17   : > { %s407_s7 = scalar_lea.vmem %s151_s4, 128  ;;  %s504_s8 = smov [#allocation2]  }
  0x18   : > { %p408_p5 = scmp.ne.s32.totalorder %s151_s4, %s407_s7  ;;  %s412_s15 = sshll.u32 %s504_s8, 4  ;;  %s413_s15 = int_to_ptr.vmem [resolvable:$false] %s412_s15 }
  0x19   : > { %s414_s16 = scalar_lea.vmem %s413_s15, 256  ;;  %p415_p10 = scmp.lt.s32.totalorder %s151_s4, %s413_s15 }
  0x1a   : > { %p410_p6 = pnand %p408_p5, %p396_p3  ;;  %p416_p12 = scmp.lt.s32.totalorder %s414_s16, %s407_s7 }
  0x1c   : > { %p411_p7 = pneg %p410_p6  ;;  %p417_p4 = por %p416_p12, %p415_p10 }
  0x1e   : > { %p418_p13 = pnand %p417_p4, %p411_p7 }
  0x20   : > { %421 = shalt.err (!%p418_p13)
}
  0x21   : > { %337 = dma.hbm_to_vmem [thread:$0]  (!%p593_p0), %s148_s30, 128, %s151_s4, %s138_s6  }
  0x22   : > { %p156_p11 = pnand %p323_p1, %p155_p2 }
  0x23   : > { %s608_s18 = sand.u32 (!%p156_p11), 1, %s486_s10  }
  0x24   : > { %159 = sbr.rel (%p156_p11) target bundleno = 183 (0xb7), region = 28  ;;  %s324_s19 = sshll.u32 (!%p156_p11), %s608_s18, 3 }
  0x25   : > { %s162_s20 = scalar_lea.sflag (!%p156_p11), [#allocation3], %s608_s18  ;;  %s165_s25 = scalar_lea.vmem (!%p156_p11), [#allocation2], %s324_s19 }
  0x29   : > { %473 = dma.done.wait (%p569_p8), %s162_s20, 128  }
  0x2a   : > { %475 = vsyncadd (%p569_p8), %s162_s20, 4294967168  ;;  %v505_v0 = vmov 0   ;;  %v195_v1 = vld [vmem:[%s659_s0] sm:$0xff]  ;;  %s327_s28 = sshll.u32 %s494_s12, 7  ;;  %s189_s29 = scalar_lea.vmem [#allocation5], %s324_s19 }
  0x2b   : > { %393 = vset.pattern.permute.xlu0 %v505_v0  ;;  %v194_v2 = vld [vmem:[%s165_s25] sm:$0xff]  ;;  %s219_s30 = sshll.u32 %s189_s29, 4  ;;  %s217_s21 = scalar_lea.hbm %s661_s2, %s327_s28  ;;  %s220_s30 = int_to_ptr.vmem [resolvable:$true] %s219_s30 }
  0x2c   : > { %198 = vperm.xlu0 %393, %v195_v1   ;;  %s204_s5 = scalar_lea.sflag [#allocation4], %s608_s18  ;;  %s422_s6 = scalar_lea.vmem %s220_s30, 128 }
  0x2d   : > { %p423_p8 = scmp.ne.s32.totalorder %s220_s30, %s422_s6  ;;  %s506_s7 = smov [#allocation5]  }
  0x2e   : > { %s426_s8 = sshll.u32 %s506_s7, 4  ;;  %s427_s8 = int_to_ptr.vmem [resolvable:$false] %s426_s8 }
  0x2f   : > { %p424_p11 = pnand %p423_p8, %p573_p9  ;;  %s428_s12 = scalar_lea.vmem %s427_s8, 256 }
  0x30   : > { %p429_p0 = scmp.lt.s32.totalorder %s220_s30, %s427_s8  ;;  %p430_p1 = scmp.lt.s32.totalorder %s428_s12, %s422_s6 }
  0x31   : > { %p425_p12 = pneg %p424_p11 }
  0x32   : > { %p431_p2 = por %p430_p1, %p429_p0 }
  0x34   : > { %p432_p3 = pnand %p431_p2, %p425_p12 }
  0xa7   : > { %v199_v3 = vpop.permute.xlu0 %198 }
  0xa8   : > { %v201_v4 = vmul.f32 %v199_v3, %v194_v2 }
  0xaa   : > { %202 = vst [vmem:[%s189_s29] sm:$0xff] %v201_v4 }
  0xab   : > { %435 = shalt.err (!%p432_p3)
}
  0xac   : > { %s436_s15 = scalar_lea.hbm %s217_s21, 128  ;;  %s440_s19 = scalar_lea.hbm %s661_s2, 256 }
  0xad   : > { %p437_p5 = scmp.ne.s32.totalorder %s217_s21, %s436_s15  ;;  %p441_p10 = scmp.lt.s32.totalorder %s217_s21, %s661_s2 }
  0xae   : > { %p442_p4 = scmp.lt.s32.totalorder %s440_s19, %s436_s15 }
  0xaf   : > { %p438_p6 = pnand %p437_p5, %p573_p9 }
  0xb0   : > { %p443_p13 = por %p442_p4, %p441_p10 }
  0xb1   : > { %p439_p7 = pneg %p438_p6 }
  0xb3   : > { %p444_p8 = pnand %p443_p13, %p439_p7 }
  0xb5   : > { %447 = shalt.err (!%p444_p8)
}
  0xb6   : > { %332 = dma.vmem_to_hbm [thread:$0]  (%p573_p9), %s220_s30, 128, %s217_s21, %s204_s5  }
  0xb7 PF: > { %s231_s26 = sand.u32 1, %s482_s9   ;;  %p667_p11 = scmp.ne.s32.totalorder %s665_s24, 0 }
  0xb8   : > { %p668_p12 = scmp.ge.s32.totalorder %s502_s14, 2  ;;  %s232_s27 = scalar_lea.sflag [#allocation4], %s231_s26 }
  0xba   : > { %p339_p0 = pnand %p668_p12, %p667_p11 }
  0xbc   : > { %p340_p1 = pneg %p339_p0 }
  0xbe   : > { %477 = dma.done.wait (%p340_p1), %s232_s27, 128  }
  0xbf   : > { %479 = vsyncadd (%p340_p1), %s232_s27, 4294967168  ;;  %s18_s14 = sadd.s32 1, %s502_s14   ;;  %s669_s9 = smov %s486_s10 }
  0xc0   : > { %p15_p2 = scmp.ge.s32.totalorder %s18_s14, 4   ;;  %s670_s10 = smov %s490_s11 }
  0xc1   : > { %s671_s11 = smov %s578_s23  ;;  %s672_s12 = smov %s498_s13 }
  0xc2   : > { %s673_s13 = smov %s675_s17  ;;  %17 = sbr.rel (!%p15_p2) target bundleno = 6 (0x6), region = 76 }
  0xc7   :  { %237 = vsyncpa [#allocation3], 1 }
  0xc8   :  { %239 = vsyncpa [#allocation3 + $0x1], 1 }
  0xc9   :  { %240 = vsyncpa [#allocation4], 1 }
  0xca   :  { %242 = vsyncpa [#allocation4 + $0x1], 1 }

</bundles_post_ra>
